<compile_context>
chip_gen: v7x
topology: tpu7x:2x2x1
jax: 0.10.0
libtpu: 0.0.40
codegen_flags: <defaults>
</compile_context>

<pallas_src>
import functools

import jax
import jax.numpy as jnp
import numpy as np
from jax.experimental import pallas as pl
from jax.experimental.pallas import tpu as pltpu

# Module hyper-parameters (from __init__ defaults)
TEMPERATURE = 2.0
SOFT_LAMBDA = 0.9
# TODO(synk): CFG.smooth_l1_beta comes from an external config; fixed to 1.0 here.
SMOOTH_L1_BETA = 1.0
EPS = 1e-7

# ~3 co-live f32 (tb, strip, n_pad) temporaries kept around <= 6 MiB.
_SLAB_BUDGET_ELEMS = (6 * 1024 * 1024) // (4 * 3)


def _smooth_l1(a, b, beta):
    d = jnp.abs(a - b)
    return jnp.where(d < beta, 0.5 * d * d / beta, d - 0.5 * beta)


def _supports_buffered():
    try:
        pl.BlockSpec((8, 128), lambda i: (0, 0), pipeline_mode=pl.Buffered(1))
        return True
    except Exception:  # older jax without pipeline_mode / Buffered
        return False


_HAS_BUFFERED = _supports_buffered()


def _grid_invariant_spec(shape):
    """Full-array block fetched identically on every grid step: single-buffer it."""
    index_map = lambda i: (0,) * len(shape)
    if _HAS_BUFFERED:
        return pl.BlockSpec(shape, index_map, pipeline_mode=pl.Buffered(1))
    return pl.BlockSpec(shape, index_map)


def _choose_tiling(n, slab_budget_elems):
    """Return (n_pad, tb, strip).

    n_pad : batch padded to a multiple of 8 (padded rows/cols are masked out).
    tb    : anchor rows per grid block (multiple of 8, capped at 128, prefer
            >= 2 blocks so the "parallel" grid axis can span both v7x TCs).
    strip : j-strip width of the in-kernel comparison slab so that ~3 co-live
            (tb, strip, n_pad) f32 temporaries respect the VMEM budget.
    """
    n_pad = ((n + 7) // 8) * 8
    divs = [d for d in range(n_pad, 7, -8) if n_pad % d == 0]  # mult-of-8 divisors, desc
    tb_cands = [d for d in divs if d <= 128 and n_pad // d >= 2] or [n_pad]
    for tb in tb_cands:
        for strip in divs:
            if tb * strip * n_pad <= slab_budget_elems:
                return n_pad, tb, strip
    # Huge n: fall back to the smallest row block and an 8-wide strip.
    return n_pad, tb_cands[-1], 8


def _rnc_kernel(feat_blk_ref, feat_all_ref, cols_ref, rows_ref, out_ref,
                rot_sc, trans_sc, logit_sc, exp_sc,
                *, n_real, n_pad, tb, strip):
    i0 = pl.program_id(0) * tb

    feat_blk = feat_blk_ref[...]   # (tb, D)   anchor rows of this grid block
    feat_all = feat_all_ref[...]   # (n_pad, D) all rows
    cols = cols_ref[...]           # (tb, 11)  packed labels (column orientation)
    rows = rows_ref[...]           # (11, n_pad) packed labels (row orientation)

    inv_beta = 1.0 / SMOOTH_L1_BETA

    def pair_sl1_mean(k0):
        # mean_k smooth_l1(x[b, k] - x[c, k]) as three lane-dense (tb, n_pad) ops
        acc = None
        for k in range(k0, k0 + 3):
            diff = jnp.abs(cols[:, k:k + 1] - rows[k:k + 1, :])       # (tb, n_pad)
            sl1 = jnp.where(diff < SMOOTH_L1_BETA,
                            0.5 * diff * diff * inv_beta,
                            diff - 0.5 * SMOOTH_L1_BETA)
            acc = sl1 if acc is None else acc + sl1
        return acc * (1.0 / 3.0)

    g_diff = pair_sl1_mean(0)      # rot_green pairwise diff  (tb, n_pad)
    r_diff = pair_sl1_mean(3)      # rot_red   pairwise diff
    t_diff = pair_sl1_mean(6)      # trans     pairwise diff

    # rows/cols touching a symmetric sample keep only the green-axis term
    sym_pair = jnp.logical_or(cols[:, 9:10] > 0.5, rows[9:10, :] > 0.5)
    rot_diff = jnp.where(sym_pair, g_diff, g_diff + r_diff)           # (tb, n_pad)

    # ---- feature similarity: -||f_b - f_c||_2 / t via Gram matrix (MXU) ----
    gram = jax.lax.dot_general(
        feat_blk, feat_all,
        dimension_numbers=(((1,), (1,)), ((), ())),
        preferred_element_type=jnp.float32)                           # (tb, n_pad)
    dist2 = jnp.maximum(cols[:, 10:11] + rows[10:11, :] - 2.0 * gram, 0.0)
    # logits <= 0 everywhere and the diagonal never enters any sum below, so
    # the torch row-max subtraction (row max == 0) is dropped exactly.
    logits = -jnp.sqrt(dist2) * (1.0 / TEMPERATURE)                   # (tb, n_pad)

    row_g = jax.lax.broadcasted_iota(jnp.int32, (tb, n_pad), 0) + i0
    col_g = jax.lax.broadcasted_iota(jnp.int32, (tb, n_pad), 1)
    valid_c = jnp.logical_and(row_g != col_g, col_g < n_real)
    exp_masked = jnp.where(valid_c, jnp.exp(logits), 0.0)             # (tb, n_pad)

    def strip_partial(j0, rot_j, t_j, lg_j, rot_full, t_full, e_full):
        # cmp[b, j, c] = diff[b, j] <= diff[b, c]; only a (tb, strip, n_pad)
        # slab is live at a time.
        cmp_rot = rot_j[:, :, None] <= rot_full[:, None, :]           # (tb, strip, n_pad)
        masked_rot = jnp.where(cmp_rot, e_full[:, None, :], 0.0)
        s_rot = jnp.sum(masked_rot, axis=-1)                          # (tb, strip)
        cmp_t = t_j[:, :, None] <= t_full[:, None, :]
        s_hard = jnp.sum(jnp.where(cmp_t, masked_rot, 0.0), axis=-1)  # (tb, strip)

        rj = jax.lax.broadcasted_iota(jnp.int32, (tb, strip), 0) + i0
        cj = jax.lax.broadcasted_iota(jnp.int32, (tb, strip), 1) + j0
        keep = jnp.logical_and(rj != cj,
                               jnp.logical_and(rj < n_real, cj < n_real))
        contrib = jnp.where(
            keep,
            (1.0 + SOFT_LAMBDA) * lg_j
            - jnp.log(s_hard + EPS)
            - SOFT_LAMBDA * jnp.log(s_rot + EPS),
            0.0)
        return jnp.sum(contrib, axis=(0, 1), keepdims=True)           # (1, 1)

    num_strips = n_pad // strip
    if num_strips == 1:
        total = strip_partial(0, rot_diff, t_diff, logits,
                              rot_diff, t_diff, exp_masked)
    else:
        # Stash the per-block (tb, n_pad) arrays in VMEM scratch so the j-strip
        # loop re-reads them (bounded live ranges) and slices them with pl.ds.
        rot_sc[...] = rot_diff
        trans_sc[...] = t_diff
        logit_sc[...] = logits
        exp_sc[...] = exp_masked

        def body(s, acc):
            j0 = s * strip
            if strip % 128 == 0:
                j0 = pl.multiple_of(j0, 128)
            return acc + strip_partial(
                j0,
                rot_sc[:, pl.ds(j0, strip)],
                trans_sc[:, pl.ds(j0, strip)],
                logit_sc[:, pl.ds(j0, strip)],
                rot_sc[...], trans_sc[...], exp_sc[...])

        total = jax.lax.fori_loop(0, num_strips, body,
                                  jnp.zeros((1, 1), jnp.float32))

    # Lane-dense per-block partial; the wrapper sums blocks and applies the
    # -1/(n*(n-1)) scale, so the grid axis can be "parallel" (megacore).
    out_ref[...] = jnp.broadcast_to(total[:, :, None], (1, 8, 128))


@functools.partial(jax.jit, static_argnames=("slab_budget_elems",))
def rnc_loss_rot_mug_mix(rot_feat, rot_green, rot_red, trans, sym,
                         *, slab_budget_elems=_SLAB_BUDGET_ELEMS):
    """Pallas implementation of RnCLoss_rot_mug_mix.forward (returns scalar).

    Note: the torch module returns None on NaN/Inf; here the scalar loss is
    always returned.
    """
    n, d = rot_feat.shape
    n_pad, tb, strip = _choose_tiling(n, slab_budget_elems)
    nb = n_pad // tb

    feat = rot_feat.astype(jnp.float32)
    green = rot_green.astype(jnp.float32)
    red = rot_red.astype(jnp.float32)
    tr = trans.astype(jnp.float32)

    sym_flag = (sym[:, 0] == 1).astype(jnp.float32)[:, None]           # (n, 1)
    sq = jnp.sum(feat * feat, axis=-1, keepdims=True)                  # (n, 1)
    # cols[:, 0:3]=green, [:,3:6]=red, [:,6:9]=trans, [:,9]=sym, [:,10]=|f|^2
    cols = jnp.concatenate([green, red, tr, sym_flag, sq], axis=1)     # (n, 11)

    if n_pad != n:
        pad = n_pad - n
        feat = jnp.pad(feat, ((0, pad), (0, 0)))
        cols = jnp.pad(cols, ((0, pad), (0, 0)))
    rows = cols.T                                                      # (11, n_pad)

    kernel = functools.partial(_rnc_kernel, n_real=n, n_pad=n_pad,
                               tb=tb, strip=strip)

    out = pl.pallas_call(
        kernel,
        out_shape=jax.ShapeDtypeStruct((nb, 8, 128), jnp.float32),
        grid=(nb,),
        in_specs=[
            pl.BlockSpec((tb, d), lambda i: (i, 0)),    # anchor feature rows
            _grid_invariant_spec((n_pad, d)),           # all feature rows
            pl.BlockSpec((tb, 11), lambda i: (i, 0)),   # packed labels (block)
            _grid_invariant_spec((11, n_pad)),          # packed labels (full, T)
        ],
        out_specs=pl.BlockSpec((1, 8, 128), lambda i: (i, 0, 0)),
        scratch_shapes=[pltpu.VMEM((tb, n_pad), jnp.float32) for _ in range(4)],
        compiler_params=pltpu.CompilerParams(
            dimension_semantics=("parallel",),
            vmem_limit_bytes=32 * 1024 * 1024),
    )(feat, feat, cols, rows)

    total = jnp.sum(out[:, 0, 0])
    return -total / (n * (n - 1))


def _reference_loss(rot_feat, rot_green, rot_red, trans, sym):
    """Plain-JAX mirror of the PyTorch code path (off-diag masked_select etc.)."""
    n = rot_feat.shape[0]
    beta = SMOOTH_L1_BETA

    g = _smooth_l1(rot_green[:, None, :], rot_green[None, :, :], beta).mean(-1)
    r = _smooth_l1(rot_red[:, None, :], rot_red[None, :, :], beta).mean(-1)
    td = _smooth_l1(trans[:, None, :], trans[None, :, :], beta).mean(-1)

    rot_diff = g + r
    sym_ind = jnp.where(sym[:, 0] == 1)[0]
    rot_diff = rot_diff.at[sym_ind, :].set(g[sym_ind, :])
    rot_diff = rot_diff.at[:, sym_ind].set(g[:, sym_ind])

    logits = -jnp.linalg.norm(rot_feat[:, None, :] - rot_feat[None, :, :], axis=-1)
    logits = logits / TEMPERATURE
    logits = logits - jnp.max(logits, axis=1, keepdims=True)
    exp_logits = jnp.exp(logits)

    mask = ~jnp.eye(n, dtype=bool)
    ov = lambda m: m[mask].reshape(n, n - 1)
    L, E, R, T = ov(logits), ov(exp_logits), ov(rot_diff), ov(td)

    R_e = jnp.broadcast_to(R[:, :, None], (n, n - 1, n - 1))
    R_c = jnp.transpose(R_e, (0, 2, 1))
    T_e = jnp.broadcast_to(T[:, :, None], (n, n - 1, n - 1))
    T_c = jnp.transpose(T_e, (0, 2, 1))

    rot_res = R_e <= R_c
    trans_res = T_e <= T_c
    hard = (rot_res & trans_res).astype(jnp.float32)

    rot_neg = jnp.transpose(rot_res, (1, 0, 2))
    hard = jnp.transpose(hard, (1, 0, 2))

    pos_rot = L.T - jnp.log((rot_neg * E).sum(-1) + EPS)
    pos_hard = L.T - jnp.log((hard * E).sum(-1) + EPS)

    loss_hard = -(pos_hard / (n * (n - 1))).sum()
    loss_rot = -(pos_rot / (n * (n - 1))).sum()
    return loss_hard + SOFT_LAMBDA * loss_rot


if __name__ == "__main__":
    def make_inputs(key, n, d):
        k1, k2, k3, k4, k5 = jax.random.split(key, 5)
        rot_feat = jax.random.normal(k1, (n, d), dtype=jnp.float32)
        rot_green = jax.random.normal(k2, (n, 3), dtype=jnp.float32)
        rot_red = jax.random.normal(k3, (n, 3), dtype=jnp.float32)
        trans = 0.5 * jax.random.normal(k4, (n, 3), dtype=jnp.float32)
        sym_flag = (jax.random.uniform(k5, (n,)) < 0.4).astype(jnp.float32)
        sym = jnp.stack([sym_flag, jnp.zeros((n,), jnp.float32)], axis=1)
        return rot_feat, rot_green, rot_red, trans, sym

    # (n, feat_dim, slab budget) -- exercises the single-block path, the padded
    # multi-block "parallel" grid path, and the in-kernel j-strip fori_loop path.
    cases = [
        (8, 32, _SLAB_BUDGET_ELEMS),
        (20, 32, _SLAB_BUDGET_ELEMS),
        (24, 32, 8 * 8 * 24),
    ]

    root = jax.random.PRNGKey(0)
    for idx, (n, d, budget) in enumerate(cases):
        args = make_inputs(jax.random.fold_in(root, idx), n, d)
        loss = jax.block_until_ready(
            rnc_loss_rot_mug_mix(*args, slab_budget_elems=budget))
        ref = jax.block_until_ready(_reference_loss(*args))
        assert np.isfinite(float(loss)), f"case {idx}: loss is not finite"
        np.testing.assert_allclose(np.asarray(loss), np.asarray(ref),
                                   rtol=1e-3, atol=1e-3)

    print("KERNEL_OK")
</pallas_src>

<mosaic_0001>
module attributes {stable_mosaic.version = 11 : i64} {
  func.func @_rnc_kernel(%arg0: i32, %arg1: memref<8x32xf32, #tpu.memory_space<vmem>>, %arg2: memref<8x32xf32, #tpu.memory_space<vmem>>, %arg3: memref<8x11xf32, #tpu.memory_space<vmem>>, %arg4: memref<11x8xf32, #tpu.memory_space<vmem>>, %arg5: memref<1x8x128xf32, #tpu.memory_space<vmem>>, %arg6: memref<8x8xf32, #tpu.memory_space<vmem>>, %arg7: memref<8x8xf32, #tpu.memory_space<vmem>>, %arg8: memref<8x8xf32, #tpu.memory_space<vmem>>, %arg9: memref<8x8xf32, #tpu.memory_space<vmem>>) attributes {dimension_semantics = [#tpu.dimension_semantics<parallel>], iteration_bounds = array<i64: 1>, scalar_prefetch = 0 : i64, scratch_operands = 4 : i64, tpu.core_type = #tpu.core_type<tc>, window_params = [{transform_indices = @transform_0, window_bounds = array<i64: 8, 32>}, {pipeline_mode = #tpu.pipeline_mode<synchronous>, transform_indices = @transform_1, window_bounds = array<i64: 8, 32>}, {transform_indices = @transform_2, window_bounds = array<i64: 8, 11>}, {pipeline_mode = #tpu.pipeline_mode<synchronous>, transform_indices = @transform_3, window_bounds = array<i64: 11, 8>}, {transform_indices = @transform_4, window_bounds = array<i64: 1, 8, 128>}]} {
    %c8_i32 = arith.constant 8 : i32
    %0 = arith.muli %arg0, %c8_i32 : i32
    %c0 = arith.constant 0 : index
    %c0_0 = arith.constant 0 : index
    %1 = vector.load %arg1[%c0, %c0_0] : memref<8x32xf32, #tpu.memory_space<vmem>>, vector<8x32xf32>
    %c0_1 = arith.constant 0 : index
    %c0_2 = arith.constant 0 : index
    %2 = vector.load %arg2[%c0_1, %c0_2] : memref<8x32xf32, #tpu.memory_space<vmem>>, vector<8x32xf32>
    %c0_3 = arith.constant 0 : index
    %c0_4 = arith.constant 0 : index
    %3 = vector.load %arg3[%c0_3, %c0_4] : memref<8x11xf32, #tpu.memory_space<vmem>>, vector<8x11xf32>
    %c0_5 = arith.constant 0 : index
    %c0_6 = arith.constant 0 : index
    %4 = vector.load %arg4[%c0_5, %c0_6] : memref<11x8xf32, #tpu.memory_space<vmem>>, vector<11x8xf32>
    %5 = vector.extract_strided_slice %3 {offsets = [0, 0], sizes = [8, 1], strides = [1, 1]} : vector<8x11xf32> to vector<8x1xf32>
    %6 = vector.extract_strided_slice %4 {offsets = [0, 0], sizes = [1, 8], strides = [1, 1]} : vector<11x8xf32> to vector<1x8xf32>
    %7 = vector.broadcast %5 : vector<8x1xf32> to vector<8x8xf32>
    %8 = vector.broadcast %6 : vector<1x8xf32> to vector<8x8xf32>
    %9 = arith.subf %7, %8 : vector<8x8xf32>
    %10 = math.absf %9 : vector<8x8xf32>
    %cst = arith.constant 1.000000e+00 : f32
    %11 = vector.broadcast %cst : f32 to vector<8x8xf32>
    %12 = arith.cmpf olt, %10, %11 : vector<8x8xf32>
    %cst_7 = arith.constant 5.000000e-01 : f32
    %13 = vector.broadcast %cst_7 : f32 to vector<8x8xf32>
    %14 = arith.mulf %13, %10 : vector<8x8xf32>
    %15 = arith.mulf %14, %10 : vector<8x8xf32>
    %cst_8 = arith.constant 1.000000e+00 : f32
    %16 = vector.broadcast %cst_8 : f32 to vector<8x8xf32>
    %17 = arith.mulf %15, %16 : vector<8x8xf32>
    %cst_9 = arith.constant 5.000000e-01 : f32
    %18 = vector.broadcast %cst_9 : f32 to vector<8x8xf32>
    %19 = arith.subf %10, %18 : vector<8x8xf32>
    %20 = arith.select %12, %17, %19 : vector<8x8xi1>, vector<8x8xf32>
    %21 = vector.extract_strided_slice %3 {offsets = [0, 1], sizes = [8, 1], strides = [1, 1]} : vector<8x11xf32> to vector<8x1xf32>
    %22 = vector.extract_strided_slice %4 {offsets = [1, 0], sizes = [1, 8], strides = [1, 1]} : vector<11x8xf32> to vector<1x8xf32>
    %23 = vector.broadcast %21 : vector<8x1xf32> to vector<8x8xf32>
    %24 = vector.broadcast %22 : vector<1x8xf32> to vector<8x8xf32>
    %25 = arith.subf %23, %24 : vector<8x8xf32>
    %26 = math.absf %25 : vector<8x8xf32>
    %cst_10 = arith.constant 1.000000e+00 : f32
    %27 = vector.broadcast %cst_10 : f32 to vector<8x8xf32>
    %28 = arith.cmpf olt, %26, %27 : vector<8x8xf32>
    %cst_11 = arith.constant 5.000000e-01 : f32
    %29 = vector.broadcast %cst_11 : f32 to vector<8x8xf32>
    %30 = arith.mulf %29, %26 : vector<8x8xf32>
    %31 = arith.mulf %30, %26 : vector<8x8xf32>
    %cst_12 = arith.constant 1.000000e+00 : f32
    %32 = vector.broadcast %cst_12 : f32 to vector<8x8xf32>
    %33 = arith.mulf %31, %32 : vector<8x8xf32>
    %cst_13 = arith.constant 5.000000e-01 : f32
    %34 = vector.broadcast %cst_13 : f32 to vector<8x8xf32>
    %35 = arith.subf %26, %34 : vector<8x8xf32>
    %36 = arith.select %28, %33, %35 : vector<8x8xi1>, vector<8x8xf32>
    %37 = arith.addf %20, %36 : vector<8x8xf32>
    %38 = vector.extract_strided_slice %3 {offsets = [0, 2], sizes = [8, 1], strides = [1, 1]} : vector<8x11xf32> to vector<8x1xf32>
    %39 = vector.extract_strided_slice %4 {offsets = [2, 0], sizes = [1, 8], strides = [1, 1]} : vector<11x8xf32> to vector<1x8xf32>
    %40 = vector.broadcast %38 : vector<8x1xf32> to vector<8x8xf32>
    %41 = vector.broadcast %39 : vector<1x8xf32> to vector<8x8xf32>
    %42 = arith.subf %40, %41 : vector<8x8xf32>
    %43 = math.absf %42 : vector<8x8xf32>
    %cst_14 = arith.constant 1.000000e+00 : f32
    %44 = vector.broadcast %cst_14 : f32 to vector<8x8xf32>
    %45 = arith.cmpf olt, %43, %44 : vector<8x8xf32>
    %cst_15 = arith.constant 5.000000e-01 : f32
    %46 = vector.broadcast %cst_15 : f32 to vector<8x8xf32>
    %47 = arith.mulf %46, %43 : vector<8x8xf32>
    %48 = arith.mulf %47, %43 : vector<8x8xf32>
    %cst_16 = arith.constant 1.000000e+00 : f32
    %49 = vector.broadcast %cst_16 : f32 to vector<8x8xf32>
    %50 = arith.mulf %48, %49 : vector<8x8xf32>
    %cst_17 = arith.constant 5.000000e-01 : f32
    %51 = vector.broadcast %cst_17 : f32 to vector<8x8xf32>
    %52 = arith.subf %43, %51 : vector<8x8xf32>
    %53 = arith.select %45, %50, %52 : vector<8x8xi1>, vector<8x8xf32>
    %54 = arith.addf %37, %53 : vector<8x8xf32>
    %cst_18 = arith.constant 0.333333343 : f32
    %55 = vector.broadcast %cst_18 : f32 to vector<8x8xf32>
    %56 = arith.mulf %54, %55 : vector<8x8xf32>
    %57 = vector.extract_strided_slice %3 {offsets = [0, 3], sizes = [8, 1], strides = [1, 1]} : vector<8x11xf32> to vector<8x1xf32>
    %58 = vector.extract_strided_slice %4 {offsets = [3, 0], sizes = [1, 8], strides = [1, 1]} : vector<11x8xf32> to vector<1x8xf32>
    %59 = vector.broadcast %57 : vector<8x1xf32> to vector<8x8xf32>
    %60 = vector.broadcast %58 : vector<1x8xf32> to vector<8x8xf32>
    %61 = arith.subf %59, %60 : vector<8x8xf32>
    %62 = math.absf %61 : vector<8x8xf32>
    %cst_19 = arith.constant 1.000000e+00 : f32
    %63 = vector.broadcast %cst_19 : f32 to vector<8x8xf32>
    %64 = arith.cmpf olt, %62, %63 : vector<8x8xf32>
    %cst_20 = arith.constant 5.000000e-01 : f32
    %65 = vector.broadcast %cst_20 : f32 to vector<8x8xf32>
    %66 = arith.mulf %65, %62 : vector<8x8xf32>
    %67 = arith.mulf %66, %62 : vector<8x8xf32>
    %cst_21 = arith.constant 1.000000e+00 : f32
    %68 = vector.broadcast %cst_21 : f32 to vector<8x8xf32>
    %69 = arith.mulf %67, %68 : vector<8x8xf32>
    %cst_22 = arith.constant 5.000000e-01 : f32
    %70 = vector.broadcast %cst_22 : f32 to vector<8x8xf32>
    %71 = arith.subf %62, %70 : vector<8x8xf32>
    %72 = arith.select %64, %69, %71 : vector<8x8xi1>, vector<8x8xf32>
    %73 = vector.extract_strided_slice %3 {offsets = [0, 4], sizes = [8, 1], strides = [1, 1]} : vector<8x11xf32> to vector<8x1xf32>
    %74 = vector.extract_strided_slice %4 {offsets = [4, 0], sizes = [1, 8], strides = [1, 1]} : vector<11x8xf32> to vector<1x8xf32>
    %75 = vector.broadcast %73 : vector<8x1xf32> to vector<8x8xf32>
    %76 = vector.broadcast %74 : vector<1x8xf32> to vector<8x8xf32>
    %77 = arith.subf %75, %76 : vector<8x8xf32>
    %78 = math.absf %77 : vector<8x8xf32>
    %cst_23 = arith.constant 1.000000e+00 : f32
    %79 = vector.broadcast %cst_23 : f32 to vector<8x8xf32>
    %80 = arith.cmpf olt, %78, %79 : vector<8x8xf32>
    %cst_24 = arith.constant 5.000000e-01 : f32
    %81 = vector.broadcast %cst_24 : f32 to vector<8x8xf32>
    %82 = arith.mulf %81, %78 : vector<8x8xf32>
    %83 = arith.mulf %82, %78 : vector<8x8xf32>
    %cst_25 = arith.constant 1.000000e+00 : f32
    %84 = vector.broadcast %cst_25 : f32 to vector<8x8xf32>
    %85 = arith.mulf %83, %84 : vector<8x8xf32>
    %cst_26 = arith.constant 5.000000e-01 : f32
    %86 = vector.broadcast %cst_26 : f32 to vector<8x8xf32>
    %87 = arith.subf %78, %86 : vector<8x8xf32>
    %88 = arith.select %80, %85, %87 : vector<8x8xi1>, vector<8x8xf32>
    %89 = arith.addf %72, %88 : vector<8x8xf32>
    %90 = vector.extract_strided_slice %3 {offsets = [0, 5], sizes = [8, 1], strides = [1, 1]} : vector<8x11xf32> to vector<8x1xf32>
    %91 = vector.extract_strided_slice %4 {offsets = [5, 0], sizes = [1, 8], strides = [1, 1]} : vector<11x8xf32> to vector<1x8xf32>
    %92 = vector.broadcast %90 : vector<8x1xf32> to vector<8x8xf32>
    %93 = vector.broadcast %91 : vector<1x8xf32> to vector<8x8xf32>
    %94 = arith.subf %92, %93 : vector<8x8xf32>
    %95 = math.absf %94 : vector<8x8xf32>
    %cst_27 = arith.constant 1.000000e+00 : f32
    %96 = vector.broadcast %cst_27 : f32 to vector<8x8xf32>
    %97 = arith.cmpf olt, %95, %96 : vector<8x8xf32>
    %cst_28 = arith.constant 5.000000e-01 : f32
    %98 = vector.broadcast %cst_28 : f32 to vector<8x8xf32>
    %99 = arith.mulf %98, %95 : vector<8x8xf32>
    %100 = arith.mulf %99, %95 : vector<8x8xf32>
    %cst_29 = arith.constant 1.000000e+00 : f32
    %101 = vector.broadcast %cst_29 : f32 to vector<8x8xf32>
    %102 = arith.mulf %100, %101 : vector<8x8xf32>
    %cst_30 = arith.constant 5.000000e-01 : f32
    %103 = vector.broadcast %cst_30 : f32 to vector<8x8xf32>
    %104 = arith.subf %95, %103 : vector<8x8xf32>
    %105 = arith.select %97, %102, %104 : vector<8x8xi1>, vector<8x8xf32>
    %106 = arith.addf %89, %105 : vector<8x8xf32>
    %cst_31 = arith.constant 0.333333343 : f32
    %107 = vector.broadcast %cst_31 : f32 to vector<8x8xf32>
    %108 = arith.mulf %106, %107 : vector<8x8xf32>
    %109 = vector.extract_strided_slice %3 {offsets = [0, 6], sizes = [8, 1], strides = [1, 1]} : vector<8x11xf32> to vector<8x1xf32>
    %110 = vector.extract_strided_slice %4 {offsets = [6, 0], sizes = [1, 8], strides = [1, 1]} : vector<11x8xf32> to vector<1x8xf32>
    %111 = vector.broadcast %109 : vector<8x1xf32> to vector<8x8xf32>
    %112 = vector.broadcast %110 : vector<1x8xf32> to vector<8x8xf32>
    %113 = arith.subf %111, %112 : vector<8x8xf32>
    %114 = math.absf %113 : vector<8x8xf32>
    %cst_32 = arith.constant 1.000000e+00 : f32
    %115 = vector.broadcast %cst_32 : f32 to vector<8x8xf32>
    %116 = arith.cmpf olt, %114, %115 : vector<8x8xf32>
    %cst_33 = arith.constant 5.000000e-01 : f32
    %117 = vector.broadcast %cst_33 : f32 to vector<8x8xf32>
    %118 = arith.mulf %117, %114 : vector<8x8xf32>
    %119 = arith.mulf %118, %114 : vector<8x8xf32>
    %cst_34 = arith.constant 1.000000e+00 : f32
    %120 = vector.broadcast %cst_34 : f32 to vector<8x8xf32>
    %121 = arith.mulf %119, %120 : vector<8x8xf32>
    %cst_35 = arith.constant 5.000000e-01 : f32
    %122 = vector.broadcast %cst_35 : f32 to vector<8x8xf32>
    %123 = arith.subf %114, %122 : vector<8x8xf32>
    %124 = arith.select %116, %121, %123 : vector<8x8xi1>, vector<8x8xf32>
    %125 = vector.extract_strided_slice %3 {offsets = [0, 7], sizes = [8, 1], strides = [1, 1]} : vector<8x11xf32> to vector<8x1xf32>
    %126 = vector.extract_strided_slice %4 {offsets = [7, 0], sizes = [1, 8], strides = [1, 1]} : vector<11x8xf32> to vector<1x8xf32>
    %127 = vector.broadcast %125 : vector<8x1xf32> to vector<8x8xf32>
    %128 = vector.broadcast %126 : vector<1x8xf32> to vector<8x8xf32>
    %129 = arith.subf %127, %128 : vector<8x8xf32>
    %130 = math.absf %129 : vector<8x8xf32>
    %cst_36 = arith.constant 1.000000e+00 : f32
    %131 = vector.broadcast %cst_36 : f32 to vector<8x8xf32>
    %132 = arith.cmpf olt, %130, %131 : vector<8x8xf32>
    %cst_37 = arith.constant 5.000000e-01 : f32
    %133 = vector.broadcast %cst_37 : f32 to vector<8x8xf32>
    %134 = arith.mulf %133, %130 : vector<8x8xf32>
    %135 = arith.mulf %134, %130 : vector<8x8xf32>
    %cst_38 = arith.constant 1.000000e+00 : f32
    %136 = vector.broadcast %cst_38 : f32 to vector<8x8xf32>
    %137 = arith.mulf %135, %136 : vector<8x8xf32>
    %cst_39 = arith.constant 5.000000e-01 : f32
    %138 = vector.broadcast %cst_39 : f32 to vector<8x8xf32>
    %139 = arith.subf %130, %138 : vector<8x8xf32>
    %140 = arith.select %132, %137, %139 : vector<8x8xi1>, vector<8x8xf32>
    %141 = arith.addf %124, %140 : vector<8x8xf32>
    %142 = vector.extract_strided_slice %3 {offsets = [0, 8], sizes = [8, 1], strides = [1, 1]} : vector<8x11xf32> to vector<8x1xf32>
    %143 = vector.extract_strided_slice %4 {offsets = [8, 0], sizes = [1, 8], strides = [1, 1]} : vector<11x8xf32> to vector<1x8xf32>
    %144 = vector.broadcast %142 : vector<8x1xf32> to vector<8x8xf32>
    %145 = vector.broadcast %143 : vector<1x8xf32> to vector<8x8xf32>
    %146 = arith.subf %144, %145 : vector<8x8xf32>
    %147 = math.absf %146 : vector<8x8xf32>
    %cst_40 = arith.constant 1.000000e+00 : f32
    %148 = vector.broadcast %cst_40 : f32 to vector<8x8xf32>
    %149 = arith.cmpf olt, %147, %148 : vector<8x8xf32>
    %cst_41 = arith.constant 5.000000e-01 : f32
    %150 = vector.broadcast %cst_41 : f32 to vector<8x8xf32>
    %151 = arith.mulf %150, %147 : vector<8x8xf32>
    %152 = arith.mulf %151, %147 : vector<8x8xf32>
    %cst_42 = arith.constant 1.000000e+00 : f32
    %153 = vector.broadcast %cst_42 : f32 to vector<8x8xf32>
    %154 = arith.mulf %152, %153 : vector<8x8xf32>
    %cst_43 = arith.constant 5.000000e-01 : f32
    %155 = vector.broadcast %cst_43 : f32 to vector<8x8xf32>
    %156 = arith.subf %147, %155 : vector<8x8xf32>
    %157 = arith.select %149, %154, %156 : vector<8x8xi1>, vector<8x8xf32>
    %158 = arith.addf %141, %157 : vector<8x8xf32>
    %cst_44 = arith.constant 0.333333343 : f32
    %159 = vector.broadcast %cst_44 : f32 to vector<8x8xf32>
    %160 = arith.mulf %158, %159 : vector<8x8xf32>
    %161 = vector.extract_strided_slice %3 {offsets = [0, 9], sizes = [8, 1], strides = [1, 1]} : vector<8x11xf32> to vector<8x1xf32>
    %cst_45 = arith.constant 5.000000e-01 : f32
    %162 = vector.broadcast %cst_45 : f32 to vector<8x1xf32>
    %163 = arith.cmpf ogt, %161, %162 : vector<8x1xf32>
    %164 = vector.extract_strided_slice %4 {offsets = [9, 0], sizes = [1, 8], strides = [1, 1]} : vector<11x8xf32> to vector<1x8xf32>
    %cst_46 = arith.constant 5.000000e-01 : f32
    %165 = vector.broadcast %cst_46 : f32 to vector<1x8xf32>
    %166 = arith.cmpf ogt, %164, %165 : vector<1x8xf32>
    %167 = vector.broadcast %163 : vector<8x1xi1> to vector<8x8xi1>
    %168 = vector.broadcast %166 : vector<1x8xi1> to vector<8x8xi1>
    %169 = arith.ori %167, %168 : vector<8x8xi1>
    %170 = arith.addf %56, %108 : vector<8x8xf32>
    %171 = arith.select %169, %56, %170 : vector<8x8xi1>, vector<8x8xf32>
    %cst_47 = arith.constant dense<0.000000e+00> : vector<8x8xf32>
    %172 = tpu.matmul %1, %2, %cst_47 {dimension_numbers = #tpu.dot_dimension_numbers<[1], [1], [0], [0], [0, 0, 1, 0], [], []>} : vector<8x32xf32>, vector<8x32xf32>, vector<8x8xf32> -> vector<8x8xf32>
    %173 = vector.extract_strided_slice %3 {offsets = [0, 10], sizes = [8, 1], strides = [1, 1]} : vector<8x11xf32> to vector<8x1xf32>
    %174 = vector.extract_strided_slice %4 {offsets = [10, 0], sizes = [1, 8], strides = [1, 1]} : vector<11x8xf32> to vector<1x8xf32>
    %175 = vector.broadcast %173 : vector<8x1xf32> to vector<8x8xf32>
    %176 = vector.broadcast %174 : vector<1x8xf32> to vector<8x8xf32>
    %177 = arith.addf %175, %176 : vector<8x8xf32>
    %cst_48 = arith.constant 2.000000e+00 : f32
    %178 = vector.broadcast %cst_48 : f32 to vector<8x8xf32>
    %179 = arith.mulf %178, %172 : vector<8x8xf32>
    %180 = arith.subf %177, %179 : vector<8x8xf32>
    %cst_49 = arith.constant 0.000000e+00 : f32
    %181 = vector.broadcast %cst_49 : f32 to vector<8x8xf32>
    %182 = arith.maximumf %180, %181 : vector<8x8xf32>
    %183 = math.sqrt %182 : vector<8x8xf32>
    %cst_50 = arith.constant 0.000000e+00 : f32
    %184 = vector.broadcast %cst_50 : f32 to vector<8x8xf32>
    %185 = arith.subf %184, %183 : vector<8x8xf32>
    %cst_51 = arith.constant 5.000000e-01 : f32
    %186 = vector.broadcast %cst_51 : f32 to vector<8x8xf32>
    %187 = arith.mulf %185, %186 : vector<8x8xf32>
    %188 = tpu.iota {dimensions = array<i32: 0>} : vector<8x8xi32>
    %189 = vector.broadcast %0 : i32 to vector<8x8xi32>
    %190 = arith.addi %188, %189 : vector<8x8xi32>
    %191 = tpu.iota {dimensions = array<i32: 1>} : vector<8x8xi32>
    %192 = arith.cmpi ne, %190, %191 : vector<8x8xi32>
    %c8_i32_52 = arith.constant 8 : i32
    %193 = vector.broadcast %c8_i32_52 : i32 to vector<8x8xi32>
    %194 = arith.cmpi slt, %191, %193 : vector<8x8xi32>
    %195 = arith.andi %192, %194 : vector<8x8xi1>
    %196 = math.exp %187 : vector<8x8xf32>
    %cst_53 = arith.constant 0.000000e+00 : f32
    %197 = vector.broadcast %cst_53 : f32 to vector<8x8xf32>
    %198 = arith.select %195, %196, %197 : vector<8x8xi1>, vector<8x8xf32>
    %199 = vector.shape_cast %171 : vector<8x8xf32> to vector<8x8x1xf32>
    %200 = vector.shape_cast %171 : vector<8x8xf32> to vector<8x1x8xf32>
    %201 = vector.broadcast %199 : vector<8x8x1xf32> to vector<8x8x8xf32>
    %202 = vector.broadcast %200 : vector<8x1x8xf32> to vector<8x8x8xf32>
    %203 = arith.cmpf ole, %201, %202 : vector<8x8x8xf32>
    %204 = vector.shape_cast %198 : vector<8x8xf32> to vector<8x1x8xf32>
    %cst_54 = arith.constant 0.000000e+00 : f32
    %205 = vector.shape_cast %204 : vector<8x1x8xf32> to vector<8x1x8xf32>
    %206 = vector.broadcast %205 : vector<8x1x8xf32> to vector<8x8x8xf32>
    %207 = vector.broadcast %cst_54 : f32 to vector<8x8x8xf32>
    %208 = arith.select %203, %206, %207 : vector<8x8x8xi1>, vector<8x8x8xf32>
    %cst_55 = arith.constant dense<0.000000e+00> : vector<8x8xf32>
    %209 = vector.multi_reduction <add>, %208, %cst_55 [2] : vector<8x8x8xf32> to vector<8x8xf32>
    %210 = vector.shape_cast %160 : vector<8x8xf32> to vector<8x8x1xf32>
    %211 = vector.shape_cast %160 : vector<8x8xf32> to vector<8x1x8xf32>
    %212 = vector.broadcast %210 : vector<8x8x1xf32> to vector<8x8x8xf32>
    %213 = vector.broadcast %211 : vector<8x1x8xf32> to vector<8x8x8xf32>
    %214 = arith.cmpf ole, %212, %213 : vector<8x8x8xf32>
    %cst_56 = arith.constant 0.000000e+00 : f32
    %215 = vector.broadcast %cst_56 : f32 to vector<8x8x8xf32>
    %216 = arith.select %214, %208, %215 : vector<8x8x8xi1>, vector<8x8x8xf32>
    %cst_57 = arith.constant dense<0.000000e+00> : vector<8x8xf32>
    %217 = vector.multi_reduction <add>, %216, %cst_57 [2] : vector<8x8x8xf32> to vector<8x8xf32>
    %218 = tpu.iota {dimensions = array<i32: 0>} : vector<8x8xi32>
    %219 = vector.broadcast %0 : i32 to vector<8x8xi32>
    %220 = arith.addi %218, %219 : vector<8x8xi32>
    %221 = tpu.iota {dimensions = array<i32: 1>} : vector<8x8xi32>
    %c0_i32 = arith.constant 0 : i32
    %222 = vector.broadcast %c0_i32 : i32 to vector<8x8xi32>
    %223 = arith.addi %221, %222 : vector<8x8xi32>
    %224 = arith.cmpi ne, %220, %223 : vector<8x8xi32>
    %c8_i32_58 = arith.constant 8 : i32
    %225 = vector.broadcast %c8_i32_58 : i32 to vector<8x8xi32>
    %226 = arith.cmpi slt, %220, %225 : vector<8x8xi32>
    %c8_i32_59 = arith.constant 8 : i32
    %227 = vector.broadcast %c8_i32_59 : i32 to vector<8x8xi32>
    %228 = arith.cmpi slt, %223, %227 : vector<8x8xi32>
    %229 = arith.andi %226, %228 : vector<8x8xi1>
    %230 = arith.andi %224, %229 : vector<8x8xi1>
    %cst_60 = arith.constant 1.900000e+00 : f32
    %231 = vector.broadcast %cst_60 : f32 to vector<8x8xf32>
    %232 = arith.mulf %231, %187 : vector<8x8xf32>
    %cst_61 = arith.constant 1.000000e-07 : f32
    %233 = vector.broadcast %cst_61 : f32 to vector<8x8xf32>
    %234 = arith.addf %217, %233 : vector<8x8xf32>
    %235 = math.log %234 : vector<8x8xf32>
    %236 = arith.subf %232, %235 : vector<8x8xf32>
    %cst_62 = arith.constant 1.000000e-07 : f32
    %237 = vector.broadcast %cst_62 : f32 to vector<8x8xf32>
    %238 = arith.addf %209, %237 : vector<8x8xf32>
    %239 = math.log %238 : vector<8x8xf32>
    %cst_63 = arith.constant 0.899999976 : f32
    %240 = vector.broadcast %cst_63 : f32 to vector<8x8xf32>
    %241 = arith.mulf %240, %239 : vector<8x8xf32>
    %242 = arith.subf %236, %241 : vector<8x8xf32>
    %cst_64 = arith.constant 0.000000e+00 : f32
    %243 = vector.broadcast %cst_64 : f32 to vector<8x8xf32>
    %244 = arith.select %230, %242, %243 : vector<8x8xi1>, vector<8x8xf32>
    %245 = vector.shape_cast %244 : vector<8x8xf32> to vector<1x8x8xf32>
    %cst_65 = arith.constant dense<0.000000e+00> : vector<1xf32>
    %246 = vector.multi_reduction <add>, %245, %cst_65 [1, 2] : vector<1x8x8xf32> to vector<1xf32>
    %247 = vector.shape_cast %246 : vector<1xf32> to vector<1x1x1xf32>
    %248 = vector.extract %247[0, 0, 0] : f32 from vector<1x1x1xf32>
    %249 = vector.broadcast %248 : f32 to vector<1x1xf32>
    %250 = vector.shape_cast %249 : vector<1x1xf32> to vector<1x1x1xf32>
    %251 = vector.shape_cast %250 : vector<1x1x1xf32> to vector<1x1x1xf32>
    %252 = vector.broadcast %251 : vector<1x1x1xf32> to vector<1x8x128xf32>
    %c0_66 = arith.constant 0 : index
    %c0_67 = arith.constant 0 : index
    %c0_68 = arith.constant 0 : index
    %253 = vector.load %arg5[%c0_66, %c0_67, %c0_68] : memref<1x8x128xf32, #tpu.memory_space<vmem>>, vector<1x8x128xf32>
    tpu.vector_store %arg5[%c0_66, %c0_67, %c0_68], %252 {strides = array<i32>} : memref<1x8x128xf32, #tpu.memory_space<vmem>>, vector<1x8x128xf32>,
    return
  }
  func.func @transform_0(%arg0: i32) -> (i32, i32) {
    %c0_i32 = arith.constant 0 : i32
    %c0_i32_0 = arith.constant 0 : i32
    return %arg0, %c0_i32 : i32, i32
  }
  func.func @transform_1(%arg0: i32) -> (i32, i32) {
    %c0_i32 = arith.constant 0 : i32
    %c0_i32_0 = arith.constant 0 : i32
    %c0_i32_1 = arith.constant 0 : i32
    return %c0_i32, %c0_i32_0 : i32, i32
  }
  func.func @transform_2(%arg0: i32) -> (i32, i32) {
    %c0_i32 = arith.constant 0 : i32
    %c0_i32_0 = arith.constant 0 : i32
    return %arg0, %c0_i32 : i32, i32
  }
  func.func @transform_3(%arg0: i32) -> (i32, i32) {
    %c0_i32 = arith.constant 0 : i32
    %c0_i32_0 = arith.constant 0 : i32
    %c0_i32_1 = arith.constant 0 : i32
    return %c0_i32, %c0_i32_0 : i32, i32
  }
  func.func @transform_4(%arg0: i32) -> (i32, i32, i32) {
    %c0_i32 = arith.constant 0 : i32
    %c0_i32_0 = arith.constant 0 : i32
    %c0_i32_1 = arith.constant 0 : i32
    return %arg0, %c0_i32, %c0_i32_0 : i32, i32, i32
  }
}

</mosaic_0001>

<bundles_post_ra>
// kernel: rnc_loss_rot_mug_mix.1
= control target key start
LH: loop header
LB: loop body
LE: loop exit
PB: predicated region body
PF: predicated region fallthrough
CT: control target
= control target key end

     0   :  { %v1021_v0 = vmov 3   ;;  %v1022_v1 = vmov 0   ;;  %vm184_vm0 = vcmask 261120   ;;  %v1023_v4 = vmov 0.0   ;;  %s1329_s2 = inlined_call_operand.vmem [shape: f32[8,11], index: 2, kind: input, shape index: {}]   ;;  %s1330_s1 = inlined_call_operand.vmem [shape: f32[8,32], index: 1, kind: input, shape index: {}, may-alias: {0,1}]   ;;  %s1331_s0 = inlined_call_operand.vmem [shape: f32[8,32], index: 0, kind: input, shape index: {}, may-alias: {0,1}]   ;;  %s1332_s3 = inlined_call_operand.vmem [shape: f32[11,8], index: 3, kind: input, shape index: {}]   ;;  %s1333_s4 = inlined_call_operand.vmem [shape: f32[1,8,128], index: 4, kind: output, shape index: {}]  }
   0x1   :  { %975 = vset.pattern.permute.xlu1 %v1021_v0  ;;  %973 = vset.pattern.permute.xlu0 %v1022_v1  ;;  %v20_v2 = vld [vmem:[%s1329_s2] sm:$0xff]  ;;  %vm1024_vm1 = vmmov 0   ;;  %v1025_v6 = vmov 4   ;;  %v1026_v7 = vmov 1   ;;  %v1027_v8 = vmov 2  }
   0x2   :  { %v19_v3 = vld [vmem:[%s1330_s1] sm:$0xff]  ;;  %73 = vperm.xlu1 %975, %v20_v2   ;;  %25 = vperm.xlu0 %973, %v20_v2   ;;  %v1028_v9 = vmov 5   ;;  %v1029_v10 = vmov 6   ;;  %v1030_v11 = vmov 8   ;;  %v1031_v12 = vmov 7  }
   0x3   :  { %952 = vmatprep.subr.mxu0 %v1023_v4  ;;  %954 = vmatprep.mubr.msk.f32.mxu0 %vm1024_vm1, %v1023_v4  ;;  %v18_v5 = vld [vmem:[%s1331_s0] sm:$0xff]  ;;  %vm168_vm2 = vcmp.gt.f32.partialorder %v20_v2, 0.5  ;;  %v1032_v13 = vmov 10   ;;  %v1033_v15 = vmov 9   ;;  %v28_v16 = vlaneseq  ;;  %v1115_v44 = vld [vmem:[%s1332_s3 + $0x8] sm:$0x7] }
   0x4   :  { %953 = vmatpush3.xpose.msk.msra.mxu0 %vm184_vm0, %v19_v3  ;;  %v170_v14 = vsel %vm168_vm2, 1, %v1022_v1  ;;  %v1083_v20 = vld [vmem:[%s1332_s3] sm:$0xff]  ;;  %vm169_vm5 = vcmp.gt.f32.partialorder %v1115_v44, 0.5 }
   0x5   :  { %v1072_v17 = vshrl.u32 %v28_v16, 7 }
   0x6   :  { %976 = vset.pattern.permute.xlu1 %v1025_v6  ;;  %974 = vset.pattern.permute.xlu0 %v1026_v7 }
   0x7   :  { %88 = vperm.xlu1 %976, %v20_v2   ;;  %40 = vperm.xlu0 %974, %v20_v2   ;;  %v1075_v18 = vsub.s32 0, %v1072_v17  ;;  %v1078_v19 = vsub.s32 1, %v1072_v17  ;;  %v1086_v21 = vsub.s32 3, %v1072_v17  ;;  %v1089_v22 = vsub.s32 4, %v1072_v17 }
   0x8   :  { %955 = vmatmul.mubr.msk.f32.vlgmr.msra.gmra.mrb[0].mxu0 %vm184_vm0, %v18_v5  ;;  %v1100_v29 = vsub.s32 2, %v1072_v17  ;;  %v1103_v31 = vsub.s32 5, %v1072_v17  ;;  %v1110_v41 = vsub.s32 6, %v1072_v17  ;;  %v1122_v55 = vsub.s32 7, %v1072_v17 }
   0x9   :  { %v31_v24 = vrot.slane %v1083_v20, %v1075_v18  ;;  %v46_v26 = vrot.slane %v1083_v20, %v1078_v19  ;;  %v79_v27 = vrot.slane %v1083_v20, %v1086_v21  ;;  %v94_v28 = vrot.slane %v1083_v20, %v1089_v22 }
   0xa   :  { %v62_v37 = vrot.slane %v1083_v20, %v1100_v29  ;;  %v110_v39 = vrot.slane %v1083_v20, %v1103_v31  ;;  %v127_v52 = vrot.slane %v1083_v20, %v1110_v41  ;;  %v158_v53 = vrot.slane %v1115_v44, %v1075_v18 }
   0xb   :  { %977 = vset.pattern.permute.xlu1 %v1027_v8  ;;  %978 = vset.pattern.permute.xlu0 %v1028_v9  ;;  %v142_v5 = vrot.slane %v1083_v20, %v1122_v55 }
   0xc   :  { %56 = vperm.xlu1 %977, %v20_v2   ;;  %104 = vperm.xlu0 %978, %v20_v2  }
  0x10   :  { %979 = vset.pattern.permute.xlu1 %v1029_v10  ;;  %981 = vset.pattern.permute.xlu0 %v1030_v11 }
  0x11   :  { %121 = vperm.xlu1 %979, %v20_v2   ;;  %152 = vperm.xlu0 %981, %v20_v2  }
  0x15   :  { %980 = vset.pattern.permute.xlu1 %v1031_v12  ;;  %984 = vset.pattern.permute.xlu0 %v1032_v13 }
  0x16   :  { %136 = vperm.xlu1 %980, %v20_v2  }
  0x1a   :  { %982 = vset.pattern.permute.xlu1 %v1033_v15 }
  0x1b   :  { %172 = vperm.xlu1 %982, %v170_v14  }
  0x1f   :  { %983 = vset.pattern.permute.xlu1 %v1032_v13 }
  0x20   :  { %262 = vperm.xlu1 %983, %v20_v2  }
  0x81   :  { %v74_v23 = vpop.permute.xlu1 %73  ;;  %v26_v25 = vpop.permute.xlu0 %25 }
  0x82   :  { %v32_v30 = vsub.f32 %v26_v25, %v31_v24  ;;  %v80_v35 = vsub.f32 %v74_v23, %v79_v27 }
  0x84   :  { %v33_v38 = vand.u32 2147483647, %v32_v30  ;;  %v81_v45 = vand.u32 2147483647, %v80_v35 }
  0x86   :  { %v89_v32 = vpop.permute.xlu1 %88  ;;  %v41_v33 = vpop.permute.xlu0 %40  ;;  %v35_v48 = vmul.f32 0.5, %v33_v38  ;;  %v83_v56 = vmul.f32 0.5, %v81_v45  ;;  %vm34_vm3 = vcmp.lt.f32.partialorder %v33_v38, 1.0  ;;  %v939_v61 = vadd.f32 -0.5, %v33_v38 }
  0x87   :  { %v47_v34 = vsub.f32 %v41_v33, %v46_v26  ;;  %v95_v36 = vsub.f32 %v89_v32, %v94_v28  ;;  %v942_v20 = vadd.f32 -0.5, %v81_v45  ;;  %v175_v28 = vsel %vm169_vm5, 1, %v1022_v1 }
  0x88   :  { %v36_v60 = vmul.f32 %v35_v48, %v33_v38  ;;  %v84_v6 = vmul.f32 %v83_v56, %v81_v45  ;;  %vm82_vm9 = vcmp.lt.f32.partialorder %v81_v45, 1.0  ;;  %vm546_vm5 = vcmask 64512  }
  0x89   :  { %v48_v40 = vand.u32 2147483647, %v47_v34  ;;  %v96_v46 = vand.u32 2147483647, %v95_v36 }
  0x8a   :  { %v38_v9 = vsel %vm34_vm3, %v36_v60, %v939_v61  ;;  %v86_v34 = vsel %vm82_vm9, %v84_v6, %v942_v20 }
  0x8b   :  { %v57_v42 = vpop.permute.xlu1 %56  ;;  %v105_v43 = vpop.permute.xlu0 %104  ;;  %v50_v50 = vmul.f32 0.5, %v48_v40  ;;  %v98_v57 = vmul.f32 0.5, %v96_v46  ;;  %v940_v62 = vadd.f32 -0.5, %v48_v40  ;;  %vm49_vm4 = vcmp.lt.f32.partialorder %v48_v40, 1.0 }
  0x8c   :  { %v63_v47 = vsub.f32 %v57_v42, %v62_v37  ;;  %v111_v49 = vsub.f32 %v105_v43, %v110_v39  ;;  %vm97_vm6 = vcmp.lt.f32.partialorder %v96_v46, 1.0  ;;  %v943_v13 = vadd.f32 -0.5, %v96_v46 }
  0x8d   :  { %v51_v0 = vmul.f32 %v50_v50, %v48_v40  ;;  %v99_v7 = vmul.f32 %v98_v57, %v96_v46  ;;  %v179_v46 = vrot.slane %v175_v28, %v1078_v19 }
  0x8e   :  { %v64_v51 = vand.u32 2147483647, %v63_v47  ;;  %v112_v54 = vand.u32 2147483647, %v111_v49 }
  0x8f   :  { %v53_v14 = vsel %vm49_vm4, %v51_v0, %v940_v62  ;;  %v101_v27 = vsel %vm97_vm6, %v99_v7, %v943_v13  ;;  %vm180_vm13 = vcmp.eq.s32.totalorder %v179_v46, 1 }
  0x90   :  { %v122_v58 = vpop.permute.xlu1 %121  ;;  %v153_v59 = vpop.permute.xlu0 %152  ;;  %v66_v63 = vmul.f32 0.5, %v64_v51  ;;  %v114_v2 = vmul.f32 0.5, %v112_v54  ;;  %v944_v23 = vadd.f32 -0.5, %v112_v54  ;;  %v941_v24 = vadd.f32 -0.5, %v64_v51 }
  0x91   :  { %v128_v3 = vsub.f32 %v122_v58, %v127_v52  ;;  %v159_v4 = vsub.f32 %v153_v59, %v158_v53  ;;  %vm113_vm7 = vcmp.lt.f32.partialorder %v112_v54, 1.0  ;;  %vm65_vm8 = vcmp.lt.f32.partialorder %v64_v51, 1.0 }
  0x92   :  { %v67_v10 = vmul.f32 %v66_v63, %v64_v51  ;;  %v115_v15 = vmul.f32 %v114_v2, %v112_v54  ;;  %v54_v36 = vadd.f32 %v53_v14, %v38_v9  ;;  %v102_v37 = vadd.f32 %v101_v27, %v86_v34 }
  0x93   :  { %v129_v8 = vand.u32 2147483647, %v128_v3  ;;  %v160_v11 = vand.u32 2147483647, %v159_v4 }
  0x94   :  { %v69_v33 = vsel %vm65_vm8, %v67_v10, %v941_v24  ;;  %v117_v35 = vsel %vm113_vm7, %v115_v15, %v944_v23 }
  0x95   :  { %v137_v12 = vpop.permute.xlu1 %136  ;;  %v131_v25 = vmul.f32 0.5, %v129_v8  ;;  %v162_v30 = vmul.f32 0.5, %v160_v11  ;;  %v945_v40 = vadd.f32 -0.5, %v129_v8  ;;  %v947_v42 = vadd.f32 -0.5, %v160_v11 }
  0x96   :  { %v143_v26 = vsub.f32 %v137_v12, %v142_v5  ;;  %v70_v43 = vadd.f32 %v69_v33, %v54_v36  ;;  %v118_v50 = vadd.f32 %v117_v35, %v102_v37  ;;  %vm130_vm10 = vcmp.lt.f32.partialorder %v129_v8, 1.0 }
  0x97   :  { %v132_v38 = vmul.f32 %v131_v25, %v129_v8  ;;  %v163_v47 = vmul.f32 %v162_v30, %v160_v11  ;;  %vm161_vm11 = vcmp.lt.f32.partialorder %v160_v11, 1.0  ;;  %v268_v11 = vrot.slane %v1115_v44, %v1100_v29 }
  0x98   :  { %v144_v32 = vand.u32 2147483647, %v143_v26  ;;  %v71_v54 = vmul.f32 0.33333334, %v70_v43  ;;  %v119_v56 = vmul.f32 0.33333334, %v118_v50 }
  0x99   :  { %v134_v45 = vsel %vm130_vm10, %v132_v38, %v945_v40  ;;  %v165_v53 = vsel %vm161_vm11, %v163_v47, %v947_v42  ;;  %v1174_v44 = vand.u32 127, %v28_v16  ;;  %v1034_v30 = vmov 1966171168  }
  0x9a   :  { %v146_v39 = vmul.f32 0.5, %v144_v32  ;;  %v946_v49 = vadd.f32 -0.5, %v144_v32  ;;  %vm145_vm12 = vcmp.lt.f32.partialorder %v144_v32, 1.0  ;;  %v173_v1 = vpop.permute.xlu1 %172  ;;  %v182_v59 = vadd.f32 %v119_v56, %v71_v54 }
  0x9b   :  { %vm174_vm14 = vcmp.eq.s32.totalorder %v173_v1, 1  ;;  %vm288_vm2 = vcmp.ne.s32.totalorder %v1072_v17, %v1174_v44  ;;  %vm289_vm3 = vcmp.lt.s32.totalorder %v1174_v44, 8 }
  0x9c   :  { %v147_v48 = vmul.f32 %v146_v39, %v144_v32  ;;  %vm181_vm15 = vmor %vm174_vm14, %vm180_vm13  ;;  %v353_v32 = vunpack.c.l.s4 %v1034_v30 }
  0x9d   :  { %v1138_v62 = vsel %vm181_vm15, %v71_v54, %v182_v59  ;;  %vm1179_vm4 = vmand %vm288_vm2, %vm289_vm3 }
  0x9e   :  { %v149_v51 = vsel %vm145_vm12, %v147_v48, %v946_v49  ;;  %v304_v0 = vrot.slane %v1138_v62, %v1078_v19  ;;  %v318_v3 = vrot.slane %v1138_v62, %v1086_v21  ;;  %v325_v5 = vrot.slane %v1138_v62, %v1089_v22 }
  0x9f   :  { %v150_v52 = vadd.f32 %v149_v51, %v134_v45  ;;  %v297_v6 = vrot.slane %v1138_v62, %v1075_v18  ;;  %v311_v7 = vrot.slane %v1138_v62, %v1100_v29  ;;  %v263_v12 = vpop.permute.xlu1 %262  ;;  %v354_v33 = vunpack.c.0.s8 %v353_v32 }
  0xa0   :  { %v269_v13 = vadd.f32 %v268_v11, %v263_v12  ;;  %v351_v46 = vcombine.high %v1138_v62, %v1138_v62 }
  0xa1   :  { %v166_v57 = vadd.f32 %v165_v53, %v150_v52  ;;  %v1184_v36 = vsub.s32 %v354_v33, %v1072_v17 }
  0xa3   :  { %v1132_v58 = vmul.f32 0.33333334, %v166_v57  ;;  %v358_v37 = vrot.slane %v1138_v62, %v1184_v36  ;;  %v365_v52 = vrot.slane %v351_v46, %v1184_v36 }
  0xa5   :  { %v581_v60 = vrot.slane %v1132_v58, %v1078_v19  ;;  %v574_v61 = vrot.slane %v1132_v58, %v1075_v18  ;;  %v588_v63 = vrot.slane %v1132_v58, %v1100_v29  ;;  %v595_v2 = vrot.slane %v1132_v58, %v1086_v21 }
  0xa6   :  { %v602_v4 = vrot.slane %v1132_v58, %v1089_v22  ;;  %v332_v19 = vrot.slane %v1138_v62, %v1103_v31  ;;  %v339_v21 = vrot.slane %v1138_v62, %v1110_v41  ;;  %v346_v22 = vrot.slane %v1138_v62, %v1122_v55 }
  0xa7   :  { %583 = vbcast.lane.b32.xlu0 %v581_v60, 256  ;;  %576 = vbcast.lane.b32.xlu1 %v574_v61, 256  ;;  %v609_v8 = vrot.slane %v1132_v58, %v1103_v31  ;;  %v623_v9 = vrot.slane %v1132_v58, %v1122_v55  ;;  %v616_v10 = vrot.slane %v1132_v58, %v1110_v41 }
  0xa8   :  { %v635_v39 = vrot.slane %v1132_v58, %v1184_v36  ;;  %v366_v40 = vcombine.high %v358_v37, %v358_v37  ;;  %v628_v50 = vcombine.high %v1132_v58, %v1132_v58  ;;  %v374_v12 = vrot.slane %v358_v37, %v1184_v36 }
  0xaa   :  { %v643_v43 = vcombine.high %v635_v39, %v635_v39  ;;  %v388_v47 = vrot.slane %v366_v40, %v1184_v36  ;;  %v642_v60 = vrot.slane %v628_v50, %v1184_v36  ;;  %v396_v30 = vcombine.high %v374_v12, %v374_v12 }
  0xab   :  { %590 = vbcast.lane.b32.xlu0 %v588_v63, 256  ;;  %306 = vbcast.lane.b32.xlu1 %v304_v0, 256  ;;  %v381_v0 = vrot.slane %v365_v52, %v1184_v36 }
  0xac   :  { %v665_v49 = vrot.slane %v643_v43, %v1184_v36  ;;  %v398_v53 = vcombine.high %v388_v47, %v388_v47  ;;  %v407_v57 = vrot.slane %v388_v47, %v1075_v18  ;;  %v644_v33 = vcombine.high %v642_v60, %v642_v60 }
  0xad   :  { %v397_v32 = vcombine.high %v381_v0, %v381_v0 }
  0xae   :  { %v675_v59 = vcombine.high %v665_v49, %v665_v49  ;;  %v684_v61 = vrot.slane %v665_v49, %v1075_v18 }
  0xaf   :  { %597 = vbcast.lane.b32.xlu0 %v595_v2, 256  ;;  %320 = vbcast.lane.b32.xlu1 %v318_v3, 256  ;;  %v367_v2 = vcombine.high %v365_v52, %v365_v52 }
  0xb3   :  { %604 = vbcast.lane.b32.xlu0 %v602_v4, 256  ;;  %327 = vbcast.lane.b32.xlu1 %v325_v5, 256  ;;  %v415_v4 = vrot.slane %v398_v53, %v1075_v18  ;;  %v411_v53 = vrot.slane %v396_v30, %v1075_v18 }
  0xb7   :  { %334 = vbcast.lane.b32.xlu1 %v332_v19, 256  ;;  %299 = vbcast.lane.b32.xlu0 %v297_v6, 256  ;;  %v692_v6 = vrot.slane %v675_v59, %v1075_v18 }
  0xbb   :  { %341 = vbcast.lane.b32.xlu1 %v339_v21, 256  ;;  %313 = vbcast.lane.b32.xlu0 %v311_v7, 256  ;;  %v1223_v7 = vrot.slane %v642_v60, %v1184_v36 }
  0xbf   :  { %348 = vbcast.lane.b32.xlu1 %v346_v22, 256  ;;  %611 = vbcast.lane.b32.xlu0 %v609_v8, 256 }
  0xc3   :  { %625 = vbcast.lane.b32.xlu1 %v623_v9, 256  ;;  %618 = vbcast.lane.b32.xlu0 %v616_v10, 256 }
  0xdb   :  { %v257_v14 = vpop.f32.mrb[0].mxu0 }
  0xdc   :  { %v270_v15 = vmul.f32 2.0, %v257_v14  ;;  %v956_v23 = vpop.f32.mrb[1].mxu0 }
  0xdd   :  { %v419_v23 = vrot.slane %v381_v0, %v1075_v18  ;;  %v674_v0 = vcombine.high %v1223_v7, %v1223_v7 }
  0xde   :  { %v271_v24 = vsub.f32 %v269_v13, %v270_v15  ;;  %v651_v13 = vrot.slane %v635_v39, %v1184_v36  ;;  %v696_v15 = vrot.slane %v1223_v7, %v1075_v18 }
  0xe0   :  { %v272_v31 = vmax.f32 %v271_v24, 0.0  ;;  %v395_v24 = vrot.slane %v367_v2, %v1184_v36  ;;  %v673_v37 = vcombine.high %v651_v13, %v651_v13 }
  0xe2   :  { %985 = vrsqrt.f32 %v272_v31  ;;  %vm275_vm0 = vcmp.eq.f32.partialorder %v272_v31, inf  ;;  %v278_v55 = vand.u32 2147483648, %v272_v31  ;;  %vm277_vm1 = vcmp.eq.f32.partialorder %v272_v31, 0.0 }
  0xe3   :  { %v399_v49 = vcombine.high %v395_v24, %v395_v24  ;;  %v688_v59 = vrot.slane %v673_v37, %v1075_v18 }
  0xec   :  { %v986_v25 = vpop.eup %985 }
  0xed   :  { %v274_v26 = vmul.f32 %v986_v25, %v272_v31 }
  0xef   :  { %v276_v20 = vsel %vm275_vm0, %v272_v31, %v274_v26 }
  0xf0   :  { %v279_v41 = vsel %vm277_vm1, %v278_v55, %v276_v20 }
  0xf1   :  { %v280_v27 = vsub.f32 0.0, %v279_v41 }
  0xf3   :  { %v1170_v28 = vmul.f32 0.5, %v280_v27 }
  0xf5   :  { %v291_v29 = vmul.f32 1.442695, %v1170_v28 }
  0xf7   :  { %987 = vpow2.f32 %v291_v29  ;;  %v403_v29 = vrot.slane %v374_v12, %v1075_v18 }
 0x101   :  { %v988_v34 = vpop.eup %987 }
 0x102   :  { %v293_v16 = vsel %vm1179_vm4, %v988_v34, 0.0 }
 0x103   :  { %v456_v38 = vrot.slane %v293_v16, %v1184_v36  ;;  %v449_v51 = vcombine.high %v293_v16, %v293_v16  ;;  %v680_v16 = vrot.slane %v651_v13, %v1075_v18 }
 0x105   :  { %v464_v42 = vcombine.high %v456_v38, %v456_v38  ;;  %v463_v63 = vrot.slane %v449_v51, %v1184_v36  ;;  %v472_v55 = vrot.slane %v456_v38, %v1184_v36  ;;  %v423_v38 = vrot.slane %v395_v24, %v1075_v18 }
 0x106   :  { %v672_v51 = vrot.slane %v644_v33, %v1184_v36 }
 0x107   :  { %v486_v48 = vrot.slane %v464_v42, %v1184_v36  ;;  %v479_v10 = vrot.slane %v463_v63, %v1184_v36  ;;  %v465_v11 = vcombine.high %v463_v63, %v463_v63  ;;  %v501_v43 = vrot.slane %v472_v55, %v1075_v18 }
 0x108   :  { %v494_v46 = vcombine.high %v472_v55, %v472_v55  ;;  %v431_v63 = vrot.slane %v399_v49, %v1075_v18  ;;  %v700_v2 = vrot.slane %v672_v51, %v1075_v18 }
 0x109   :  { %v505_v54 = vrot.slane %v486_v48, %v1075_v18  ;;  %v496_v56 = vcombine.high %v486_v48, %v486_v48  ;;  %v517_v20 = vrot.slane %v479_v10, %v1075_v18  ;;  %v493_v41 = vrot.slane %v465_v11, %v1184_v36 }
 0x10a   :  { %v495_v48 = vcombine.high %v479_v10, %v479_v10 }
 0x10b   :  { %v513_v19 = vrot.slane %v496_v56, %v1075_v18  ;;  %v521_v47 = vrot.slane %v493_v41, %v1075_v18  ;;  %v497_v36 = vcombine.high %v493_v41, %v493_v41 }
 0x10d   :  { %v529_v12 = vrot.slane %v497_v36, %v1075_v18 }
 0x119   :  { %v584_v1 = vpop.permute.xlu0 %583  ;;  %v1200_v45 = vpop.permute.xlu1 %576 }
 0x11a   :  { %vm1211_vm7 = vcmp.le.f32.partialorder %v584_v1, %v684_v61  ;;  %vm1258_vm14 = vcmp.le.f32.partialorder %v1200_v45, %v680_v16  ;;  %v509_v61 = vrot.slane %v494_v46, %v1075_v18 }
 0x11d   :  { %v1207_v62 = vpop.permute.xlu0 %590  ;;  %v307_v58 = vpop.permute.xlu1 %306 }
 0x11e   :  { %vm441_vm6 = vcmp.le.f32.partialorder %v307_v58, %v407_v57  ;;  %v525_v58 = vrot.slane %v495_v48, %v1075_v18  ;;  %vm719_vm1 = vcmp.le.f32.partialorder %v1207_v62, %v688_v59 }
 0x11f   :  { %v1216_v5 = vsel %vm441_vm6, %v505_v54, 0.0  ;;  %v427_v54 = vrot.slane %v397_v32, %v1075_v18 }
 0x120   :  { %v550_v21 = vsel %vm546_vm5, %v1216_v5, 0.0  ;;  %v726_v22 = vsel %vm1211_vm7, %v1216_v5, 0.0  ;;  %vm825_vm7 = vcmask 1041409  }
 0x121   :  { %v598_v8 = vpop.permute.xlu0 %597  ;;  %v321_v9 = vpop.permute.xlu1 %320  ;;  %551 = vadd.xlane.f32.xlu1 %v550_v21  ;;  %v736_v24 = vsel %vm546_vm5, %v726_v22, 0.0 }
 0x122   :  { %vm720_vm8 = vcmp.le.f32.partialorder %v598_v8, %v692_v6  ;;  %vm443_vm9 = vcmp.le.f32.partialorder %v321_v9, %v415_v4  ;;  %v676_v8 = vcombine.high %v672_v51, %v672_v51 }
 0x123   :  { %v1231_v14 = vsel %vm443_vm9, %v513_v19, 0.0  ;;  %vm827_vm9 = vcmask 1042434  }
 0x124   :  { %v1238_v31 = vsel %vm720_vm8, %v1231_v14, 0.0 }
 0x125   :  { %v605_v25 = vpop.permute.xlu0 %604  ;;  %v328_v26 = vpop.permute.xlu1 %327  ;;  %v742_v3 = vsel %vm546_vm5, %v1238_v31, 0.0 }
 0x126   :  { %vm1243_vm10 = vcmp.le.f32.partialorder %v605_v25, %v696_v15  ;;  %vm444_vm11 = vcmp.le.f32.partialorder %v328_v26, %v419_v23  ;;  %v704_v15 = vrot.slane %v674_v0, %v1075_v18  ;;  %v708_v23 = vrot.slane %v676_v8, %v1075_v18 }
 0x127   :  { %v1248_v34 = vsel %vm444_vm11, %v517_v20, 0.0  ;;  %v556_v25 = vsel %vm546_vm5, %v1231_v14, 0.0  ;;  %vm831_vm11 = vcmask 1044484  }
 0x128   :  { %v729_v39 = vsel %vm1243_vm10, %v1248_v34, 0.0  ;;  %v559_v18 = vsel %vm546_vm5, %v1248_v34, 0.0  ;;  %vm829_vm10 = vcmask 1043459  }
 0x129   :  { %v300_v40 = vpop.permute.xlu0 %299  ;;  %v335_v42 = vpop.permute.xlu1 %334  ;;  %v745_v22 = vsel %vm546_vm5, %v729_v39, 0.0 }
 0x12a   :  { %vm440_vm12 = vcmp.le.f32.partialorder %v300_v40, %v403_v29  ;;  %vm445_vm13 = vcmp.le.f32.partialorder %v335_v42, %v423_v38 }
 0x12b   :  { %v538_v1 = vsel %vm440_vm12, %v501_v43, 0.0  ;;  %v543_v52 = vsel %vm445_vm13, %v521_v47, 0.0  ;;  %vm833_vm12 = vcmask 1045509   ;;  %vm835_vm13 = vcmask 1046534  }
 0x12c   :  { %v547_v56 = vsel %vm546_vm5, %v538_v1, 0.0  ;;  %v725_v57 = vsel %vm1258_vm14, %v538_v1, 0.0  ;;  %v562_v5 = vsel %vm546_vm5, %v543_v52, 0.0  ;;  %vm837_vm14 = vcmask 1047559  }
 0x12d   :  { %v314_v60 = vpop.permute.xlu0 %313  ;;  %v342_v45 = vpop.permute.xlu1 %341  ;;  %548 = vadd.xlane.f32.xlu0 %v547_v56  ;;  %v733_v6 = vsel %vm546_vm5, %v725_v57, 0.0 }
 0x12e   :  { %vm442_vm15 = vcmp.le.f32.partialorder %v314_v60, %v411_v53  ;;  %vm446_vm0 = vcmp.le.f32.partialorder %v342_v45, %v427_v54 }
 0x12f   :  { %v540_v4 = vsel %vm442_vm15, %v509_v61, 0.0  ;;  %v544_v19 = vsel %vm446_vm0, %v525_v58, 0.0 }
 0x130   :  { %v553_v21 = vsel %vm546_vm5, %v540_v4, 0.0  ;;  %v727_v9 = vsel %vm719_vm1, %v540_v4, 0.0  ;;  %v565_v14 = vsel %vm546_vm5, %v544_v19, 0.0 }
 0x131   :  { %v612_v10 = vpop.permute.xlu0 %611  ;;  %v349_v11 = vpop.permute.xlu1 %348  ;;  %734 = vadd.xlane.f32.xlu0 %v733_v6  ;;  %554 = vadd.xlane.f32.xlu1 %v553_v21  ;;  %v739_v29 = vsel %vm546_vm5, %v727_v9, 0.0 }
 0x132   :  { %vm1279_vm2 = vcmp.le.f32.partialorder %v612_v10, %v700_v2  ;;  %vm447_vm3 = vcmp.le.f32.partialorder %v349_v11, %v431_v63 }
 0x133   :  { %v730_v62 = vsel %vm1279_vm2, %v543_v52, 0.0  ;;  %v545_v13 = vsel %vm447_vm3, %v529_v12, 0.0 }
 0x134   :  { %v748_v30 = vsel %vm546_vm5, %v730_v62, 0.0  ;;  %v568_v32 = vsel %vm546_vm5, %v545_v13, 0.0 }
 0x135   :  { %v619_v26 = vpop.permute.xlu0 %618  ;;  %v626_v55 = vpop.permute.xlu1 %625  ;;  %737 = vadd.xlane.f32.xlu0 %v736_v24  ;;  %557 = vadd.xlane.f32.xlu1 %v556_v25 }
 0x136   :  { %vm723_vm6 = vcmp.le.f32.partialorder %v619_v26, %v704_v15  ;;  %vm724_vm8 = vcmp.le.f32.partialorder %v626_v55, %v708_v23 }
 0x137   :  { %v731_v20 = vsel %vm723_vm6, %v544_v19, 0.0  ;;  %v732_v41 = vsel %vm724_vm8, %v545_v13, 0.0 }
 0x138   :  { %v751_v31 = vsel %vm546_vm5, %v731_v20, 0.0  ;;  %v754_v33 = vsel %vm546_vm5, %v732_v41, 0.0 }
 0x139   :  { %740 = vadd.xlane.f32.xlu0 %v739_v29  ;;  %560 = vadd.xlane.f32.xlu1 %v559_v18 }
 0x13d   :  { %743 = vadd.xlane.f32.xlu0 %v742_v3  ;;  %563 = vadd.xlane.f32.xlu1 %v562_v5 }
 0x141   :  { %746 = vadd.xlane.f32.xlu0 %v745_v22  ;;  %566 = vadd.xlane.f32.xlu1 %v565_v14  ;;  %v795_v14 = vsub.s32 %v1174_v44, %v1072_v17 }
 0x145   :  { %749 = vadd.xlane.f32.xlu0 %v748_v30  ;;  %569 = vadd.xlane.f32.xlu1 %v568_v32 }
 0x149   :  { %752 = vadd.xlane.f32.xlu0 %v751_v31 }
 0x14d   :  { %755 = vadd.xlane.f32.xlu0 %v754_v33 }
 0x1ae   :  { %v552_v27 = vpop.xlane.xlu1 %551 }
 0x1af   :  { %v842_v40 = vadd.f32 1e-07, %v552_v27 }
 0x1b1   :  { %989 = vlog2.f32 %v842_v40 }
 0x1ba   :  { %v549_v34 = vpop.xlane.xlu0 %548 }
 0x1bb   :  { %v841_v42 = vadd.f32 1e-07, %v549_v34  ;;  %v990_v36 = vpop.eup %989 }
 0x1bc   :  { %v852_v12 = vmul.f32 0.6931472, %v990_v36 }
 0x1bd   :  { %991 = vlog2.f32 %v841_v42 }
 0x1be   :  { %v735_v16 = vpop.xlane.xlu0 %734  ;;  %v555_v37 = vpop.xlane.xlu1 %554  ;;  %v866_v55 = vmul.f32 0.9, %v852_v12 }
 0x1bf   :  { %v761_v47 = vadd.f32 1e-07, %v735_v16  ;;  %v843_v48 = vadd.f32 1e-07, %v555_v37 }
 0x1c0   :  { %v888_v17 = vrot.slane %v866_v55, %v795_v14 }
 0x1c1   :  { %993 = vlog2.f32 %v761_v47 }
 0x1c2   :  { %v738_v38 = vpop.xlane.xlu0 %737  ;;  %v558_v39 = vpop.xlane.xlu1 %557  ;;  %995 = vlog2.f32 %v843_v48 }
 0x1c3   :  { %v762_v49 = vadd.f32 1e-07, %v738_v38  ;;  %v844_v50 = vadd.f32 1e-07, %v558_v39 }
 0x1c5   :  { %997 = vlog2.f32 %v762_v49 }
 0x1c6   :  { %v741_v43 = vpop.xlane.xlu0 %740  ;;  %v561_v46 = vpop.xlane.xlu1 %560  ;;  %999 = vlog2.f32 %v844_v50 }
 0x1c7   :  { %v763_v52 = vadd.f32 1e-07, %v741_v43  ;;  %v845_v53 = vadd.f32 1e-07, %v561_v46  ;;  %v992_v2 = vpop.eup %991 }
 0x1c8   :  { %v850_v13 = vmul.f32 0.6931472, %v992_v2 }
 0x1c9   :  { %1001 = vlog2.f32 %v763_v52 }
 0x1ca   :  { %v744_v1 = vpop.xlane.xlu0 %743  ;;  %v564_v51 = vpop.xlane.xlu1 %563  ;;  %1003 = vlog2.f32 %v845_v53  ;;  %v865_v18 = vmul.f32 0.9, %v850_v13 }
 0x1cb   :  { %v764_v54 = vadd.f32 1e-07, %v744_v1  ;;  %v846_v56 = vadd.f32 1e-07, %v564_v51  ;;  %v994_v4 = vpop.eup %993 }
 0x1cc   :  { %v996_v19 = vpop.eup %995  ;;  %v770_v30 = vmul.f32 0.6931472, %v994_v4  ;;  %v884_v42 = vrot.slane %v865_v18, %v795_v14 }
 0x1cd   :  { %1005 = vlog2.f32 %v764_v54  ;;  %v854_v25 = vmul.f32 0.6931472, %v996_v19 }
 0x1ce   :  { %v747_v57 = vpop.xlane.xlu0 %746  ;;  %v567_v59 = vpop.xlane.xlu1 %566  ;;  %1007 = vlog2.f32 %v846_v56  ;;  %v796_v47 = vrot.slane %v770_v30, %v795_v14 }
 0x1cf   :  { %v765_v60 = vadd.f32 1e-07, %v747_v57  ;;  %v847_v45 = vadd.f32 1e-07, %v567_v59  ;;  %v998_v21 = vpop.eup %997  ;;  %v867_v33 = vmul.f32 0.9, %v854_v25 }
 0x1d0   :  { %v1000_v9 = vpop.eup %999  ;;  %v772_v20 = vmul.f32 0.6931472, %v998_v21 }
 0x1d1   :  { %1009 = vlog2.f32 %v765_v60  ;;  %v856_v41 = vmul.f32 0.6931472, %v1000_v9  ;;  %v892_v44 = vrot.slane %v867_v33, %v795_v14 }
 0x1d2   :  { %v750_v61 = vpop.xlane.xlu0 %749  ;;  %v570_v58 = vpop.xlane.xlu1 %569  ;;  %1011 = vlog2.f32 %v847_v45  ;;  %v800_v16 = vrot.slane %v772_v20, %v795_v14 }
 0x1d3   :  { %v766_v63 = vadd.f32 1e-07, %v750_v61  ;;  %v848_v0 = vadd.f32 1e-07, %v570_v58  ;;  %v1002_v10 = vpop.eup %1001  ;;  %v868_v37 = vmul.f32 0.9, %v856_v41  ;;  %v913_v61 = vsel %vm825_vm7, %v888_v17, %v884_v42 }
 0x1d4   :  { %v1004_v11 = vpop.eup %1003  ;;  %v774_v3 = vmul.f32 0.6931472, %v1002_v10  ;;  %v826_v52 = vsel %vm825_vm7, %v800_v16, %v796_v47  ;;  %v760_v10 = vmul.f32 1.9, %v1170_v28 }
 0x1d5   :  { %1013 = vlog2.f32 %v766_v63  ;;  %v858_v5 = vmul.f32 0.6931472, %v1004_v11  ;;  %v896_v53 = vrot.slane %v868_v37, %v795_v14 }
 0x1d6   :  { %1015 = vlog2.f32 %v848_v0  ;;  %v753_v6 = vpop.xlane.xlu0 %752  ;;  %v804_v43 = vrot.slane %v774_v3, %v795_v14  ;;  %v914_v0 = vsel %vm827_vm9, %v892_v44, %v913_v61 }
 0x1d7   :  { %v767_v8 = vadd.f32 1e-07, %v753_v6  ;;  %v1006_v62 = vpop.eup %1005  ;;  %v869_v46 = vmul.f32 0.9, %v858_v5  ;;  %v915_v19 = vsel %vm829_vm10, %v896_v53, %v914_v0 }
 0x1d8   :  { %v1008_v23 = vpop.eup %1007  ;;  %v776_v32 = vmul.f32 0.6931472, %v1006_v62  ;;  %v828_v59 = vsel %vm827_vm9, %v804_v43, %v826_v52 }
 0x1d9   :  { %1017 = vlog2.f32 %v767_v8  ;;  %v860_v31 = vmul.f32 0.6931472, %v1008_v23  ;;  %v900_v60 = vrot.slane %v869_v46, %v795_v14 }
 0x1da   :  { %v756_v7 = vpop.xlane.xlu0 %755  ;;  %v808_v48 = vrot.slane %v776_v32, %v795_v14 }
 0x1db   :  { %v768_v15 = vadd.f32 1e-07, %v756_v7  ;;  %v1010_v24 = vpop.eup %1009  ;;  %v870_v49 = vmul.f32 0.9, %v860_v31  ;;  %v916_v9 = vsel %vm831_vm11, %v900_v60, %v915_v19 }
 0x1dc   :  { %v1012_v26 = vpop.eup %1011  ;;  %v778_v27 = vmul.f32 0.6931472, %v1010_v24  ;;  %v830_v58 = vsel %vm829_vm10, %v808_v48, %v828_v59 }
 0x1dd   :  { %1019 = vlog2.f32 %v768_v15  ;;  %v862_v34 = vmul.f32 0.6931472, %v1012_v26  ;;  %v904_v36 = vrot.slane %v870_v49, %v795_v14 }
 0x1de   :  { %v812_v1 = vrot.slane %v778_v27, %v795_v14 }
 0x1df   :  { %v1014_v29 = vpop.eup %1013  ;;  %v871_v51 = vmul.f32 0.9, %v862_v34  ;;  %v917_v7 = vsel %vm833_vm12, %v904_v36, %v916_v9 }
 0x1e0   :  { %v1016_v22 = vpop.eup %1015  ;;  %v780_v38 = vmul.f32 0.6931472, %v1014_v29  ;;  %v832_v2 = vsel %vm831_vm11, %v812_v1, %v830_v58 }
 0x1e1   :  { %v864_v39 = vmul.f32 0.6931472, %v1016_v22  ;;  %v908_v4 = vrot.slane %v871_v51, %v795_v14 }
 0x1e2   :  { %v816_v54 = vrot.slane %v780_v38, %v795_v14 }
 0x1e3   :  { %v1018_v40 = vpop.eup %1017  ;;  %v872_v56 = vmul.f32 0.9, %v864_v39  ;;  %v918_v13 = vsel %vm835_vm13, %v908_v4, %v917_v7 }
 0x1e4   :  { %v782_v50 = vmul.f32 0.6931472, %v1018_v40  ;;  %v834_v6 = vsel %vm833_vm12, %v816_v54, %v832_v2 }
 0x1e5   :  { %v912_v21 = vrot.slane %v872_v56, %v795_v14 }
 0x1e6   :  { %v820_v45 = vrot.slane %v782_v50, %v795_v14 }
 0x1e7   :  { %v1020_v57 = vpop.eup %1019  ;;  %v919_v15 = vsel %vm837_vm14, %v912_v21, %v918_v13 }
 0x1e8   :  { %v784_v63 = vmul.f32 0.6931472, %v1020_v57  ;;  %v836_v11 = vsel %vm835_vm13, %v820_v45, %v834_v6 }
 0x1ea   :  { %v824_v8 = vrot.slane %v784_v63, %v795_v14 }
 0x1ec   :  { %v838_v12 = vsel %vm837_vm14, %v824_v8, %v836_v11 }
 0x1ed   :  { %v840_v62 = vsub.f32 %v760_v10, %v838_v12 }
 0x1ef   :  { %v921_v23 = vsub.f32 %v840_v62, %v919_v15 }
 0x1f1   :  { %v922_v24 = vsel %vm1179_vm4, %v921_v23, 0.0 }
 0x1f2   :  { %v923_v25 = vsel %vm546_vm5, %v922_v24, 0.0 }
 0x1f3   :  { %924 = vadd.xlane.f32.xlu1 %v923_v25 }
 0x280   :  { %v925_v26 = vpop.xlane.xlu1 %924 }
 0x281   :  { %v926_v55 = vrot.slane %v925_v26, 4 }
 0x283   :  { %v927_v20 = vadd.f32 %v926_v55, %v925_v26 }
 0x285   :  { %v928_v41 = vrot.slane %v927_v20, 2 }
 0x287   :  { %v929_v28 = vadd.f32 %v928_v41, %v927_v20 }
 0x289   :  { %v930_v29 = vrot.slane %v929_v28, 1 }
 0x28b   :  { %v931_v18 = vadd.f32 %v930_v29, %v929_v28 }
 0x28d   :  { %957 = vpush %v931_v18 }
 0x2be   :  { %s958_s3 = spop %957 }
 0x2bf   :  { %v933_v3 = vstv %s958_s3 }
 0x2c0   :  { %934 = vst [vmem:[%s1333_s4] sm:$0xff] %v933_v3 }

</bundles_post_ra>
